<compile_context>
chip_gen: v6e
topology: v6e:2x2x1
jax: 0.10.0
libtpu: 0.0.40
codegen_flags: <defaults>
</compile_context>

<pallas_src>
import jax
import jax.numpy as jnp
from jax import lax
from jax.experimental import pallas as pl
from jax.experimental.pallas import tpu as pltpu

N_HIDDEN = 16
INPUT_DIM = 2          # bw=False -> 2 feature columns
OUT_DIM = 16
N_STATES = 6
N_STATES_PAD = 8       # padded to a sublane multiple; padded table rows are 0
STATE_EMB_DIM = 2
IN_ROWS = 8            # packed input rows: [state, f0, f1, 1, 0, 0, 0, 0]


def context_kernel(c_ref, w1e_ref, w2t_ref, w2b_ref, wpt_ref, tbt_ref, o_ref):
    ci = c_ref[...]                                   # [8, tm] int32 (lane-dense rows)
    xf = ci.astype(jnp.float32)                       # [8, tm]
    idx = ci[0:1, :]                                  # [1, tm] state index

    # Layer 1: K=8 MXU dot. Column 0 of w1e zeroes the state row; column 3
    # carries b1 through the all-ones input row.
    h1 = jnp.dot(w1e_ref[...], xf, preferred_element_type=jnp.float32)   # [16, tm]
    h1 = jnp.maximum(h1, 0.0)

    # Layer 2: w2^T @ h1, with b2 injected through the all-ones input row via a
    # second tiny dot (keeps the bias off the VPU broadcast path).
    h2 = (jnp.dot(w2t_ref[...], h1, preferred_element_type=jnp.float32)
          + jnp.dot(w2b_ref[...], xf, preferred_element_type=jnp.float32))
    h2 = jnp.maximum(h2, 0.0)                         # [16, tm]

    # One-hot(state) from a single broadcast iota compare (6 states padded to
    # 8), pushed through the MXU against the folded (Embedding @ wp_state + bp)
    # table. State indices outside [0, 6) contribute nothing (PyTorch
    # nn.Embedding would raise on those, so they are out of spec).
    states = lax.broadcasted_iota(jnp.int32, (N_STATES_PAD, ci.shape[1]), 0)
    onehot = (states == idx).astype(jnp.float32)      # [8, tm]

    out = (jnp.dot(wpt_ref[...], h2, preferred_element_type=jnp.float32)
           + jnp.dot(tbt_ref[...], onehot, preferred_element_type=jnp.float32))
    o_ref[...] = out.astype(o_ref.dtype)              # [16, tm] unmasked stores


def _round_up(a, b):
    return (a + b - 1) // b * b


def _pick_tile(M, tm):
    """Row-tile (lane count): multiple of 128, capped so the grid has >= 2
    steps when possible (v7x megacore), with a padded tail instead of a
    divisibility requirement."""
    m128 = _round_up(max(M, 1), 128)
    tm_eff = min(_round_up(max(tm, 128), 128), m128)
    if m128 >= 256:
        tm_eff = min(tm_eff, _round_up((m128 + 1) // 2, 128))
    tm_eff = max(tm_eff, 128)
    Mp = _round_up(M, tm_eff)
    return tm_eff, Mp


def context_net_pallas(c, params, tm=16384):
    """c: int [B, T, N, 1+INPUT_DIM] -> float32 [B, T, N, OUT_DIM]."""
    w1, b1, w2, b2, emb, wp, bp = (params[k] for k in
                                   ("w1", "b1", "w2", "b2", "emb", "wp", "bp"))
    B, T, N, F = c.shape
    assert F == 1 + INPUT_DIM
    M = B * T * N
    tm_eff, Mp = _pick_tile(M, tm)

    f32 = jnp.float32
    # Layer-1 weights folded for the packed input rows [state, f0, f1, 1, 0...]:
    # column 0 zeroes the state row, column 3 is b1 (picked up by the ones row).
    w1e = jnp.concatenate(
        [jnp.zeros((N_HIDDEN, 1), f32), w1.T.astype(f32),
         b1.astype(f32)[:, None], jnp.zeros((N_HIDDEN, IN_ROWS - 4), f32)],
        axis=1)                                                        # [16, 8]
    w2t = w2.T.astype(f32)                                             # [16, 16]
    w2b = jnp.zeros((N_HIDDEN, IN_ROWS), f32).at[:, 3].set(b2.astype(f32))  # [16, 8]
    wpt = wp[STATE_EMB_DIM:].T.astype(f32)                             # [16, 16]
    # Embedding @ wp_state + bp folded into a 6x16 table (exactly one one-hot
    # lane fires per valid row), padded to 8 states and transposed.
    table = (emb.astype(f32) @ wp[:STATE_EMB_DIM].astype(f32)
             + bp.astype(f32)[None, :])                                # [6, 16]
    tbt = jnp.zeros((OUT_DIM, N_STATES_PAD), f32).at[:, :N_STATES].set(table.T)

    # Pack the input lane-dense: [8, Mp] int32, rows = [state, f0, f1, 1, 0x4].
    c_rows = c.reshape(M, F).astype(jnp.int32)
    c8 = jnp.concatenate(
        [c_rows.T,
         jnp.ones((1, M), jnp.int32),
         jnp.zeros((IN_ROWS - F - 1, M), jnp.int32)], axis=0)          # [8, M]
    if Mp != M:
        c8 = jnp.pad(c8, ((0, 0), (0, Mp - M)))                        # pad cols: zero

    out = pl.pallas_call(
        context_kernel,
        out_shape=jax.ShapeDtypeStruct((OUT_DIM, Mp), jnp.float32),
        grid_spec=pltpu.PrefetchScalarGridSpec(
            num_scalar_prefetch=0,
            grid=(Mp // tm_eff,),
            in_specs=[
                pl.BlockSpec((IN_ROWS, tm_eff), lambda i: (0, i)),        # packed rows
                pl.BlockSpec((N_HIDDEN, IN_ROWS), lambda i: (0, 0)),      # w1e
                pl.BlockSpec((N_HIDDEN, N_HIDDEN), lambda i: (0, 0)),     # w2^T
                pl.BlockSpec((N_HIDDEN, IN_ROWS), lambda i: (0, 0)),      # b2 inject
                pl.BlockSpec((OUT_DIM, N_HIDDEN), lambda i: (0, 0)),      # wp_joint^T
                pl.BlockSpec((OUT_DIM, N_STATES_PAD), lambda i: (0, 0)),  # folded table^T
            ],
            out_specs=pl.BlockSpec((OUT_DIM, tm_eff), lambda i: (0, i)),
        ),
        compiler_params=pltpu.CompilerParams(
            dimension_semantics=("parallel",)),
    )(c8, w1e, w2t, w2b, wpt, tbt)

    # Undo the lane-dense transpose in the wrapper (layout plumbing only).
    return out[:, :M].T.reshape(B, T, N, OUT_DIM)


def make_params(key):
    ks = jax.random.split(key, 7)
    scale = 0.1
    return dict(
        w1=scale * jax.random.normal(ks[0], (INPUT_DIM, N_HIDDEN), jnp.float32),
        b1=scale * jax.random.normal(ks[1], (N_HIDDEN,), jnp.float32),
        w2=scale * jax.random.normal(ks[2], (N_HIDDEN, N_HIDDEN), jnp.float32),
        b2=scale * jax.random.normal(ks[3], (N_HIDDEN,), jnp.float32),
        emb=scale * jax.random.normal(ks[4], (N_STATES, STATE_EMB_DIM), jnp.float32),
        wp=scale * jax.random.normal(ks[5], (STATE_EMB_DIM + N_HIDDEN, OUT_DIM), jnp.float32),
        bp=scale * jax.random.normal(ks[6], (OUT_DIM,), jnp.float32),
    )


def context_net_ref(c, params):
    """Pure-JAX reference mirroring the PyTorch forward."""
    x = c[..., 1:].astype(jnp.float32)
    h = jnp.maximum(x @ params["w1"] + params["b1"], 0.0)
    joint = jnp.maximum(h @ params["w2"] + params["b2"], 0.0)
    last = params["emb"][c[..., 0]]
    cat = jnp.concatenate([last, joint], axis=-1)
    return cat @ params["wp"] + params["bp"]


if __name__ == "__main__":
    key = jax.random.PRNGKey(0)
    k_params, k_state, k_feat = jax.random.split(key, 3)

    # Small shapes consistent with the module: 88 pitches per frame.
    B, T, N = 2, 8, 88                         # M = 1408 rows
    params = make_params(k_params)

    state = jax.random.randint(k_state, (B, T, N, 1), 0, N_STATES, dtype=jnp.int32)
    feats = jax.random.randint(k_feat, (B, T, N, INPUT_DIM), -3, 4, dtype=jnp.int32)
    c = jnp.concatenate([state, feats], axis=-1)   # [B, T, N, 3] int32

    ref = context_net_ref(c, params)

    # Exercise both the default (2-step, megacore-friendly) grid and a smaller
    # multi-step grid with a padded (non-divisible) tail.
    for tile in (16384, 256):
        out = jax.block_until_ready(context_net_pallas(c, params, tm=tile))
        assert out.shape == (B, T, N, OUT_DIM)
        assert jnp.allclose(out, ref, atol=1e-5, rtol=1e-5), f"mismatch (tm={tile})"

    print("KERNEL_OK")
</pallas_src>

<mosaic_0001>
module attributes {stable_mosaic.version = 11 : i64} {
  func.func @context_kernel(%arg0: i32, %arg1: memref<8x768xi32, #tpu.memory_space<vmem>>, %arg2: memref<16x8xf32, #tpu.memory_space<vmem>>, %arg3: memref<16x16xf32, #tpu.memory_space<vmem>>, %arg4: memref<16x8xf32, #tpu.memory_space<vmem>>, %arg5: memref<16x16xf32, #tpu.memory_space<vmem>>, %arg6: memref<16x8xf32, #tpu.memory_space<vmem>>, %arg7: memref<16x768xf32, #tpu.memory_space<vmem>>) attributes {dimension_semantics = [#tpu.dimension_semantics<parallel>], iteration_bounds = array<i64: 2>, scalar_prefetch = 0 : i64, scratch_operands = 0 : i64, tpu.core_type = #tpu.core_type<tc>, window_params = [{transform_indices = @transform_0, window_bounds = array<i64: 8, 768>}, {pipeline_mode = #tpu.pipeline_mode<synchronous>, transform_indices = @transform_1, window_bounds = array<i64: 16, 8>}, {pipeline_mode = #tpu.pipeline_mode<synchronous>, transform_indices = @transform_2, window_bounds = array<i64: 16, 16>}, {pipeline_mode = #tpu.pipeline_mode<synchronous>, transform_indices = @transform_3, window_bounds = array<i64: 16, 8>}, {pipeline_mode = #tpu.pipeline_mode<synchronous>, transform_indices = @transform_4, window_bounds = array<i64: 16, 16>}, {pipeline_mode = #tpu.pipeline_mode<synchronous>, transform_indices = @transform_5, window_bounds = array<i64: 16, 8>}, {transform_indices = @transform_6, window_bounds = array<i64: 16, 768>}]} {
    %c0 = arith.constant 0 : index
    %c0_0 = arith.constant 0 : index
    %0 = vector.load %arg1[%c0, %c0_0] : memref<8x768xi32, #tpu.memory_space<vmem>>, vector<8x768xi32>
    %1 = arith.sitofp %0 : vector<8x768xi32> to vector<8x768xf32>
    %2 = vector.extract_strided_slice %0 {offsets = [0, 0], sizes = [1, 768], strides = [1, 1]} : vector<8x768xi32> to vector<1x768xi32>
    %c0_1 = arith.constant 0 : index
    %c0_2 = arith.constant 0 : index
    %3 = vector.load %arg2[%c0_1, %c0_2] : memref<16x8xf32, #tpu.memory_space<vmem>>, vector<16x8xf32>
    %cst = arith.constant dense<0.000000e+00> : vector<16x768xf32>
    %4 = tpu.matmul %3, %1, %cst {dimension_numbers = #tpu.dot_dimension_numbers<[1], [0], [0], [1], [0, 0, 1, 1], [], []>} : vector<16x8xf32>, vector<8x768xf32>, vector<16x768xf32> -> vector<16x768xf32>
    %cst_3 = arith.constant 0.000000e+00 : f32
    %5 = vector.broadcast %cst_3 : f32 to vector<16x768xf32>
    %6 = arith.maximumf %4, %5 : vector<16x768xf32>
    %c0_4 = arith.constant 0 : index
    %c0_5 = arith.constant 0 : index
    %7 = vector.load %arg3[%c0_4, %c0_5] : memref<16x16xf32, #tpu.memory_space<vmem>>, vector<16x16xf32>
    %cst_6 = arith.constant dense<0.000000e+00> : vector<16x768xf32>
    %8 = tpu.matmul %7, %6, %cst_6 {dimension_numbers = #tpu.dot_dimension_numbers<[1], [0], [0], [1], [0, 0, 1, 1], [], []>} : vector<16x16xf32>, vector<16x768xf32>, vector<16x768xf32> -> vector<16x768xf32>
    %c0_7 = arith.constant 0 : index
    %c0_8 = arith.constant 0 : index
    %9 = vector.load %arg4[%c0_7, %c0_8] : memref<16x8xf32, #tpu.memory_space<vmem>>, vector<16x8xf32>
    %cst_9 = arith.constant dense<0.000000e+00> : vector<16x768xf32>
    %10 = tpu.matmul %9, %1, %cst_9 {dimension_numbers = #tpu.dot_dimension_numbers<[1], [0], [0], [1], [0, 0, 1, 1], [], []>} : vector<16x8xf32>, vector<8x768xf32>, vector<16x768xf32> -> vector<16x768xf32>
    %11 = arith.addf %8, %10 : vector<16x768xf32>
    %cst_10 = arith.constant 0.000000e+00 : f32
    %12 = vector.broadcast %cst_10 : f32 to vector<16x768xf32>
    %13 = arith.maximumf %11, %12 : vector<16x768xf32>
    %14 = tpu.iota {dimensions = array<i32: 0>} : vector<8x768xi32>
    %15 = vector.broadcast %2 : vector<1x768xi32> to vector<8x768xi32>
    %16 = arith.cmpi eq, %14, %15 : vector<8x768xi32>
    %17 = arith.extui %16 : vector<8x768xi1> to vector<8x768xi32>
    %18 = arith.sitofp %17 : vector<8x768xi32> to vector<8x768xf32>
    %c0_11 = arith.constant 0 : index
    %c0_12 = arith.constant 0 : index
    %19 = vector.load %arg5[%c0_11, %c0_12] : memref<16x16xf32, #tpu.memory_space<vmem>>, vector<16x16xf32>
    %cst_13 = arith.constant dense<0.000000e+00> : vector<16x768xf32>
    %20 = tpu.matmul %19, %13, %cst_13 {dimension_numbers = #tpu.dot_dimension_numbers<[1], [0], [0], [1], [0, 0, 1, 1], [], []>} : vector<16x16xf32>, vector<16x768xf32>, vector<16x768xf32> -> vector<16x768xf32>
    %c0_14 = arith.constant 0 : index
    %c0_15 = arith.constant 0 : index
    %21 = vector.load %arg6[%c0_14, %c0_15] : memref<16x8xf32, #tpu.memory_space<vmem>>, vector<16x8xf32>
    %cst_16 = arith.constant dense<0.000000e+00> : vector<16x768xf32>
    %22 = tpu.matmul %21, %18, %cst_16 {dimension_numbers = #tpu.dot_dimension_numbers<[1], [0], [0], [1], [0, 0, 1, 1], [], []>} : vector<16x8xf32>, vector<8x768xf32>, vector<16x768xf32> -> vector<16x768xf32>
    %23 = arith.addf %20, %22 : vector<16x768xf32>
    %c0_17 = arith.constant 0 : index
    %c0_18 = arith.constant 0 : index
    %24 = vector.load %arg7[%c0_17, %c0_18] : memref<16x768xf32, #tpu.memory_space<vmem>>, vector<16x768xf32>
    tpu.vector_store %arg7[%c0_17, %c0_18], %23 {strides = array<i32>} : memref<16x768xf32, #tpu.memory_space<vmem>>, vector<16x768xf32>,
    return
  }
  func.func @transform_0(%arg0: i32) -> (i32, i32) {
    %c0_i32 = arith.constant 0 : i32
    %c0_i32_0 = arith.constant 0 : i32
    return %c0_i32, %arg0 : i32, i32
  }
  func.func @transform_1(%arg0: i32) -> (i32, i32) {
    %c0_i32 = arith.constant 0 : i32
    %c0_i32_0 = arith.constant 0 : i32
    %c0_i32_1 = arith.constant 0 : i32
    return %c0_i32, %c0_i32_0 : i32, i32
  }
  func.func @transform_2(%arg0: i32) -> (i32, i32) {
    %c0_i32 = arith.constant 0 : i32
    %c0_i32_0 = arith.constant 0 : i32
    %c0_i32_1 = arith.constant 0 : i32
    return %c0_i32, %c0_i32_0 : i32, i32
  }
  func.func @transform_3(%arg0: i32) -> (i32, i32) {
    %c0_i32 = arith.constant 0 : i32
    %c0_i32_0 = arith.constant 0 : i32
    %c0_i32_1 = arith.constant 0 : i32
    return %c0_i32, %c0_i32_0 : i32, i32
  }
  func.func @transform_4(%arg0: i32) -> (i32, i32) {
    %c0_i32 = arith.constant 0 : i32
    %c0_i32_0 = arith.constant 0 : i32
    %c0_i32_1 = arith.constant 0 : i32
    return %c0_i32, %c0_i32_0 : i32, i32
  }
  func.func @transform_5(%arg0: i32) -> (i32, i32) {
    %c0_i32 = arith.constant 0 : i32
    %c0_i32_0 = arith.constant 0 : i32
    %c0_i32_1 = arith.constant 0 : i32
    return %c0_i32, %c0_i32_0 : i32, i32
  }
  func.func @transform_6(%arg0: i32) -> (i32, i32) {
    %c0_i32 = arith.constant 0 : i32
    %c0_i32_0 = arith.constant 0 : i32
    return %c0_i32, %arg0 : i32, i32
  }
}

</mosaic_0001>

<bundles_post_ra>
// kernel: tpu_custom_call.1
= control target key start
LH: loop header
LB: loop body
LE: loop exit
PB: predicated region body
PF: predicated region fallthrough
CT: control target
= control target key end

     0   :  { %11 = vsyncpa [#allocation3], 0  ;;  %s2163_s0 = inlined_call_operand.hbm [shape: s32[8,1536], index: 0, kind: input, shape index: {}]   ;;  %s2164_s1 = inlined_call_operand.vmem [shape: f32[16,8], index: 1, kind: input, shape index: {}]   ;;  %s2165_s2 = inlined_call_operand.vmem [shape: f32[16,16], index: 2, kind: input, shape index: {}]   ;;  %s2166_s3 = inlined_call_operand.vmem [shape: f32[16,8], index: 3, kind: input, shape index: {}]   ;;  %s2167_s4 = inlined_call_operand.vmem [shape: f32[16,16], index: 4, kind: input, shape index: {}]   ;;  %s2168_s5 = inlined_call_operand.vmem [shape: f32[16,8], index: 5, kind: input, shape index: {}]   ;;  %s2169_s6 = inlined_call_operand.hbm [shape: f32[16,1536], index: 6, kind: output, shape index: {}]  }
   0x1   :  { %13 = vsyncpa [#allocation3 + $0x1], 0 }
   0x2   :  { %14 = vsyncpa [#allocation4], 0 }
   0x3   :  { %16 = vsyncpa [#allocation4 + $0x1], 0  ;;  %s1890_s21 = smov 0   ;;  %s1892_s22 = smov 0  }
   0x4   :  { %s1894_s23 = smov 0   ;;  %s1896_s24 = smov 0  }
   0x5 LB: > { %s1911_s25 = sadd.s32 4294967295, %s1846_s24   ;;  %s1646_s26 = sadd.s32 4294967294, %s1846_s24   ;;  %s1846_s24 = sphi %s1896_s24, %s2185_s24   ;;  %s1842_s23 = sphi %s1894_s23, %s2184_s23   ;;  %s1838_s22 = sphi %s1892_s22, %s2183_s22   ;;  %s1834_s21 = sphi %s1890_s21, %s2182_s21  }
   0x6   : > { %s1915_s27 = sadd.s32 1, %s1846_s24   ;;  %s29_s28 = sadd.s32 1, %s1842_s23 }
   0x7   : > { %s26_s29 = ssub.s32 %s1846_s24, %s1915_s27  ;;  %p36_p0 = scmp.ne.s32.totalorder %s1842_s23, %s1838_s22 }
   0x8   : > { %p27_p1 = scmp.eq.s32.totalorder %s26_s29, 0  ;;  %p37_p2 = scmp.eq.s32.totalorder %s1846_s24, 0 }
   0x9   : > { %p42_p3 = scmp.ne.s32.totalorder %s1838_s22, %s1834_s21  ;;  %p43_p4 = scmp.eq.s32.totalorder %s1911_s25, 0 }
   0xa   : > { %s1927_s30 = scalar_select %p27_p1, %s1842_s23, %s29_s28  }
   0xb   : > { %p38_p5 = por %p37_p2, %p36_p0  ;;  %p1929_p6 = por %p43_p4, %p42_p3 }
   0xc   : > { %p171_p7 = scmp.eq.s32.totalorder %s1911_s25, 1  ;;  %p177_p8 = scmp.eq.s32.totalorder %s1646_s26, 1 }
   0xd   : > { %s2172_s7 = scalar_select %p1929_p6, 1, 0 }
   0xe   : > { %p1715_p10 = scmp.lt.s32.totalorder %s1846_s24, 2  ;;  %p1936_p11 = por %p171_p7, %p36_p0 }
   0xf   : > { %p1940_p12 = por %p177_p8, %p42_p3  ;;  %s212_s10 = sand.u32 1, %s1842_s23  }
  0x10   : > { %s2173_s8 = scalar_select %p1936_p11, 1, 0 }
  0x11   : > { %s2174_s9 = scalar_select %p1940_p12, 1, 0 }
  0x12   : > { %s1696_s11 = smul.u32 768, %s1846_s24  ;;  %p1951_p13 = pnand %p1715_p10, %p38_p5 }
  0x13   : > { %s1700_s12 = smul.u32 48, %s212_s10  ;;  %s213_s19 = scalar_lea.sflag [#allocation3], %s212_s10 }
  0x14   : > { %s1949_s15 = scalar_lea.hbm %s2163_s0, %s1696_s11  ;;  %p1756_p3 = pneg %p1951_p13 }
  0x15   : > { %s216_s17 = scalar_lea.vmem [#allocation2], %s1700_s12  ;;  %s1754_s20 = scalar_lea.hbm %s1949_s15, 768 }
  0x16   : > { %s224_s18 = sshll.u32 %s216_s17, 4  ;;  %p1755_p2 = scmp.ne.s32.totalorder %s1949_s15, %s1754_s20  ;;  %s225_s18 = int_to_ptr.vmem [resolvable:$true] %s224_s18 }
  0x17   : > { %s1759_s29 = scalar_lea.hbm %s2163_s0, 1536  ;;  %p1760_p5 = scmp.lt.s32.totalorder %s1949_s15, %s2163_s0 }
  0x18   : > { %p1757_p4 = pnand %p1756_p3, %p1755_p2  ;;  %p1761_p8 = scmp.lt.s32.totalorder %s1759_s29, %s1754_s20 }
  0x1a   : > { %p1758_p7 = pneg %p1757_p4  ;;  %p1762_p10 = por %p1761_p8, %p1760_p5 }
  0x1c   : > { %p1763_p9 = pnand %p1762_p10, %p1758_p7 }
  0x1e   : > { %1766 = shalt.err (!%p1763_p9)
}
  0x1f   : > { %s1767_s12 = scalar_lea.vmem %s225_s18, 768  ;;  %s1848_s10 = smov [#allocation2]  }
  0x20   : > { %p1768_p0 = scmp.ne.s32.totalorder %s225_s18, %s1767_s12  ;;  %s1772_s14 = sshll.u32 %s1848_s10, 4  ;;  %s1773_s14 = int_to_ptr.vmem [resolvable:$false] %s1772_s14 }
  0x21   : > { %s1774_s17 = scalar_lea.vmem %s1773_s14, 1536  ;;  %p1775_p2 = scmp.lt.s32.totalorder %s225_s18, %s1773_s14 }
  0x22   : > { %p1770_p1 = pnand %p1768_p0, %p1756_p3  ;;  %p1776_p4 = scmp.lt.s32.totalorder %s1774_s17, %s1767_s12 }
  0x24   : > { %p1771_p12 = pneg %p1770_p1  ;;  %p1777_p11 = por %p1776_p4, %p1775_p2 }
  0x26   : > { %p1778_p6 = pnand %p1777_p11, %p1771_p12 }
  0x28   : > { %1781 = shalt.err (!%p1778_p6)
}
  0x29   : > { %1710 = dma.hbm_to_vmem [thread:$0]  (!%p1951_p13), %s1949_s15, 768, %s225_s18, %s213_s19  }
  0x2a   : > { %p2176_p9 = scmp.lt.s32.totalorder %s1846_s24, 3  ;;  %p2177_p7 = scmp.ge.s32.totalorder %s1846_s24, 1 }
  0x2c   : > { %p230_p5 = pnand %p2177_p7, %p2176_p9 }
  0x2d   : > { %s1976_s20 = sand.u32 (!%p230_p5), 1, %s1838_s22   ;;  %p2178_p6 = scmp.ne.s32.totalorder (!%p230_p5), %s2172_s7, 0 }
  0x2e   : > { %233 = sbr.rel (%p230_p5) target bundleno = 691 (0x2b3), region = 44  ;;  %s236_s28 = scalar_lea.sflag (!%p230_p5), [#allocation3], %s1976_s20 }
  0x2f   : > { %s1701_s26 = smul.u32 (!%p230_p5), 48, %s1976_s20 }
  0x31   : > { %s239_s29 = scalar_lea.vmem (!%p230_p5), [#allocation2], %s1701_s26 }
  0x33   : > { %1825 = dma.done.wait (%p2178_p6), %s236_s28, 768  }
  0x34   : > { %1827 = vsyncadd (%p2178_p6), %s236_s28, 4294966528  ;;  %v1849_v0 = vmov 0.0   ;;  %v1986_v1 = vld [vmem:[%s239_s29 + $0x8] sm:$0xff]  ;;  %v1988_v2 = vld [vmem:[%s239_s29] sm:$0xff]  ;;  %vm284_vm0 = vcmask 64512   ;;  %vm775_vm1 = vcmask 130048   ;;  %v1025_v43 = vlaneseq }
  0x35   : > { %355 = vmatprep.mubr.f32.mxu0 %v1849_v0  ;;  %361 = vmatprep.mubr.f32.mxu1 %v1849_v0  ;;  %v277_v3 = vcvt.s32.f32 %v1986_v1  ;;  %v276_v4 = vcvt.s32.f32 %v1988_v2  ;;  %v282_v5 = vld [vmem:[%s2164_s1] sm:$0xff]  ;;  %v1995_v6 = vld [vmem:[%s239_s29 + $0x18] sm:$0xff]  ;;  %v1997_v7 = vld [vmem:[%s239_s29 + $0x28] sm:$0xff]  ;;  %v1850_v50 = vmov 1.0   ;;  %s1702_s13 = smul.u32 96, %s1976_s20  ;;  %s1560_s28 = scalar_lea.sflag [#allocation4], %s1976_s20 }
  0x36   : > { %v283_v8 = vld [vmem:[%s2164_s1 + $0x8] sm:$0xff]  ;;  %v279_v9 = vcvt.s32.f32 %v1995_v6  ;;  %v281_v10 = vcvt.s32.f32 %v1997_v7  ;;  %v2004_v11 = vld [vmem:[%s239_s29 + $0x10] sm:$0xff]  ;;  %v2006_v12 = vld [vmem:[%s239_s29 + $0x20] sm:$0xff]  ;;  %v1026_v44 = vshrl.u32 %v1025_v43, 7  ;;  %s1697_s10 = smul.u32 768, %s1911_s25  ;;  %p2179_p12 = scmp.ne.s32.totalorder %s2173_s8, 0 }
  0x37   : > { %321 = vmatprep.subr.mxu0 %v277_v3  ;;  %1698 = vmatprep.subr.mxu1 %v277_v3  ;;  %v278_v13 = vcvt.s32.f32 %v2004_v11  ;;  %v280_v14 = vcvt.s32.f32 %v2006_v12  ;;  %v536_v15 = vld [vmem:[%s2166_s3] sm:$0xff]  ;;  %v537_v16 = vld [vmem:[%s2166_s3 + $0x8] sm:$0xff]  ;;  %s2099_s12 = scalar_lea.vmem [#allocation5], %s1702_s13  ;;  %s1851_s15 = smov [#allocation5]  }
  0x38   : > { %322 = vmatpush1.msra.mxu0 %v276_v4  ;;  %1699 = vmatpush1.msra.mxu1 %v276_v4  ;;  %v534_v29 = vld [vmem:[%s2165_s2] sm:$0xff]  ;;  %v535_v34 = vld [vmem:[%s2165_s2 + $0x8] sm:$0xff]  ;;  %v1029_v45 = vsub.s32 0, %v1026_v44  ;;  %s1573_s14 = sshll.u32 %s2099_s12, 4  ;;  %s2114_s26 = scalar_lea.hbm %s2169_s6, %s1697_s10  ;;  %s2117_s14 = int_to_ptr.vmem [resolvable:$true] %s1573_s14 }
  0x39   : > { %1651 = vmatmul.mubr.msk.f32.vlgmr.msra.gmra.mxu0 %vm284_vm0, %v282_v5  ;;  %1652 = vmatmul.mubr.msk.f32.vlgmr.msra.gmra.mxu1 %vm284_vm0, %v283_v8  ;;  %v1071_v51 = vld [vmem:[%s2168_s5] sm:$0xff]  ;;  %v1072_v52 = vld [vmem:[%s2168_s5 + $0x8] sm:$0xff]  ;;  %s1782_s29 = scalar_lea.vmem %s2117_s14, 1536  ;;  %s1786_s16 = sshll.u32 %s1851_s15, 4  ;;  %s1787_s16 = int_to_ptr.vmem [resolvable:$false] %s1786_s16 }
  0x3a   : > { %398 = vmatprep.subr.mxu1 %v279_v9  ;;  %475 = vmatprep.subr.mxu0 %v281_v10  ;;  %v1030_v46 = vrot.slane %v1988_v2, %v1029_v45  ;;  %v1034_v47 = vrot.slane %v1986_v1, %v1029_v45  ;;  %v1042_v48 = vrot.slane %v1995_v6, %v1029_v45  ;;  %p1783_p11 = scmp.ne.s32.totalorder %s2117_s14, %s1782_s29  ;;  %s1788_s7 = scalar_lea.vmem %s1787_s16, 3072 }
  0x3b   : > { %399 = vmatpush1.msra.mxu1 %v278_v13  ;;  %432 = vmatprep.mubr.f32.mxu1 %v1849_v0  ;;  %v1038_v49 = vrot.slane %v2004_v11, %v1029_v45  ;;  %v1050_v53 = vrot.slane %v1997_v7, %v1029_v45  ;;  %v1046_v54 = vrot.slane %v2006_v12, %v1029_v45  ;;  %p1789_p1 = scmp.lt.s32.totalorder %s2117_s14, %s1787_s16  ;;  %p1790_p3 = scmp.lt.s32.totalorder %s1788_s7, %s1782_s29 }
  0x3c   : > { %476 = vmatpush1.msra.mxu0 %v280_v14  ;;  %509 = vmatprep.mubr.f32.mxu0 %v1849_v0  ;;  %vm1052_vm2 = vcmp.eq.s32.totalorder %v1026_v44, %v1034_v47  ;;  %vm1054_vm3 = vcmp.eq.s32.totalorder %v1026_v44, %v1042_v48  ;;  %vm1051_vm4 = vcmp.eq.s32.totalorder %v1026_v44, %v1030_v46  ;;  %p1784_p13 = pnand %p1783_p11, %p2179_p12 }
  0x3d   : > { %1653 = vmatmul.mubr.msk.f32.vlgmr.msra.gmra.mxu1 %vm284_vm0, %v282_v5  ;;  %1655 = vmatmul.mubr.msk.f32.vlgmr.msra.gmra.mxu0 %vm284_vm0, %v282_v5  ;;  %vm1053_vm5 = vcmp.eq.s32.totalorder %v1026_v44, %v1038_v49  ;;  %vm1056_vm6 = vcmp.eq.s32.totalorder %v1026_v44, %v1050_v53  ;;  %vm1055_vm7 = vcmp.eq.s32.totalorder %v1026_v44, %v1046_v54  ;;  %p1791_p8 = por %p1790_p3, %p1789_p1 }
  0x3e   : > { %438 = vmatprep.mubr.f32.mxu1 %v1849_v0  ;;  %515 = vmatprep.mubr.f32.mxu0 %v1849_v0  ;;  %p1785_p0 = pneg %p1784_p13 }
  0x3f   : > { %574 = vmatprep.subr.mxu1 %v277_v3  ;;  %651 = vmatprep.subr.mxu0 %v279_v9 }
  0x40   : > { %575 = vmatpush1.msra.mxu1 %v276_v4  ;;  %652 = vmatpush1.msra.mxu0 %v278_v13  ;;  %p1792_p10 = pnand %p1791_p8, %p1785_p0 }
  0x41   : > { %1654 = vmatmul.mubr.msk.f32.gmra.mxu1 %vm284_vm0, %v283_v8  ;;  %1656 = vmatmul.mubr.msk.f32.gmra.mxu0 %vm284_vm0, %v283_v8 }
  0x42   : > { %608 = vmatprep.mubr.f32.mxu1 %v1849_v0  ;;  %685 = vmatprep.mubr.f32.mxu0 %v1849_v0 }
  0x43   : > { %728 = vmatprep.subr.mxu1 %v281_v10 }
  0x45   : > { %1657 = vmatmul.mubr.msk.f32.vlgmr.msra.gmra.mxu1 %vm284_vm0, %v536_v15  ;;  %1659 = vmatmul.mubr.msk.f32.vlgmr.msra.gmra.mxu0 %vm284_vm0, %v536_v15 }
  0x46   : > { %614 = vmatprep.mubr.f32.mxu1 %v1849_v0  ;;  %691 = vmatprep.mubr.f32.mxu0 %v1849_v0 }
  0x47   : > { %729 = vmatpush1.msra.mxu1 %v280_v14 }
  0x49   : > { %1658 = vmatmul.mubr.msk.f32.gmra.mxu1 %vm284_vm0, %v537_v16  ;;  %1660 = vmatmul.mubr.msk.f32.gmra.mxu0 %vm284_vm0, %v537_v16 }
  0x4a   : > { %762 = vmatprep.mubr.f32.mxu1 %v1849_v0  ;;  %846 = vmatprep.mubr.f32.mxu0 %v1849_v0 }
  0x4d   : > { %1661 = vmatmul.mubr.msk.f32.vlgmr.msra.gmra.mxu1 %vm284_vm0, %v536_v15 }
  0x4e   : > { %768 = vmatprep.mubr.f32.mxu1 %v1849_v0 }
  0x51   : > { %1662 = vmatmul.mubr.msk.f32.gmra.mxu1 %vm284_vm0, %v537_v16 }
  0x52   : > { %923 = vmatprep.mubr.f32.mxu1 %v1849_v0 }
  0xf9   : > { %v357_v17 = vpop.f32.mrf.mxu0  ;;  %v363_v18 = vpop.f32.mrf.mxu1 }
  0xfa   : > { %v528_v22 = vmax.f32 %v363_v18, 0.0  ;;  %v522_v26 = vmax.f32 %v357_v17, 0.0 }
  0xfb   : > { %v359_v19 = vpop.f32.mrf.mxu0  ;;  %v365_v20 = vpop.f32.mrf.mxu1 }
  0xfc   : > { %v529_v21 = vmax.f32 %v365_v20, 0.0  ;;  %v523_v25 = vmax.f32 %v359_v19, 0.0  ;;  %v1069_v20 = vld [vmem:[%s2167_s4] sm:$0xff] }
  0xfd   : > { %v434_v23 = vpop.f32.mrf.mxu1  ;;  %v511_v24 = vpop.f32.mrf.mxu0 }
  0xfe   : > { %810 = vmatprep.subr.mxu0 %v529_v21  ;;  %v524_v40 = vmax.f32 %v434_v23, 0.0  ;;  %v526_v42 = vmax.f32 %v511_v24, 0.0 }
  0xff   : > { %v436_v27 = vpop.f32.mrf.mxu1  ;;  %v513_v28 = vpop.f32.mrf.mxu0  ;;  %811 = vmatpush1.msra.mxu0 %v528_v22 }
 0x100   : > { %812 = vmatprep.subr.mxu0 %v523_v25  ;;  %v525_v38 = vmax.f32 %v436_v27, 0.0  ;;  %v527_v41 = vmax.f32 %v513_v28, 0.0 }
 0x101   : > { %v440_v30 = vpop.f32.mrf.mxu1  ;;  %v517_v31 = vpop.f32.mrf.mxu0  ;;  %813 = vmatpush1.msra.mxu0 %v522_v26 }
 0x102   : > { %1663 = vmatmul.mubr.msk.f32.vlgmr.msra.gmra.mxu0 %vm775_vm1, %v534_v29  ;;  %v530_v37 = vmax.f32 %v440_v30, 0.0  ;;  %v532_v39 = vmax.f32 %v517_v31, 0.0  ;;  %v1070_v31 = vld [vmem:[%s2167_s4 + $0x8] sm:$0xff] }
 0x103   : > { %v442_v32 = vpop.f32.mrf.mxu1  ;;  %v519_v33 = vpop.f32.mrf.mxu0  ;;  %852 = vmatprep.mubr.f32.mxu0 %v1849_v0 }
 0x104   : > { %v531_v35 = vmax.f32 %v442_v32, 0.0  ;;  %v533_v36 = vmax.f32 %v519_v33, 0.0 }
 0x105   : > { %v610_v55 = vpop.f32.mrf.mxu1  ;;  %v687_v57 = vpop.f32.mrf.mxu0 }
 0x106   : > { %1664 = vmatmul.mubr.msk.f32.gmra.mxu0 %vm775_vm1, %v535_v34  ;;  %887 = vmatprep.subr.mxu1 %v531_v35 }
 0x107   : > { %964 = vmatprep.subr.mxu0 %v533_v36  ;;  %888 = vmatpush1.msra.mxu1 %v530_v37  ;;  %v612_v56 = vpop.f32.mrf.mxu1  ;;  %v689_v59 = vpop.f32.mrf.mxu0 }
 0x108   : > { %965 = vmatpush1.msra.mxu0 %v532_v39  ;;  %889 = vmatprep.subr.mxu1 %v525_v38 }
 0x109   : > { %966 = vmatprep.subr.mxu0 %v527_v41  ;;  %890 = vmatpush1.msra.mxu1 %v524_v40  ;;  %v616_v58 = vpop.f32.mrf.mxu1  ;;  %v693_v61 = vpop.f32.mrf.mxu0 }
 0x10a   : > { %967 = vmatpush1.msra.mxu0 %v526_v42  ;;  %1000 = vmatprep.mubr.f32.mxu0 %v1849_v0 }
 0x10b   : > { %1665 = vmatmul.mubr.msk.f32.vlgmr.msra.gmra.mxu1 %vm775_vm1, %v534_v29  ;;  %1667 = vmatmul.mubr.msk.f32.vlgmr.msra.gmra.mxu0 %vm775_vm1, %v534_v29  ;;  %v618_v60 = vpop.f32.mrf.mxu1  ;;  %v695_v63 = vpop.f32.mrf.mxu0 }
 0x10c   : > { %929 = vmatprep.mubr.f32.mxu1 %v1849_v0  ;;  %1006 = vmatprep.mubr.f32.mxu0 %v1849_v0 }
 0x10d   : > { %1675 = vmatprep.subr.msk.mxu1 %vm1052_vm2, %v1850_v50  ;;  %1679 = vmatprep.subr.msk.mxu0 %vm1054_vm3, %v1850_v50  ;;  %v764_v62 = vpop.f32.mrf.mxu1 }
 0x10e   : > { %1676 = vmatpush1.msk.msra.mxu1 %vm1051_vm4, %v1850_v50  ;;  %1680 = vmatpush1.msk.msra.mxu0 %vm1053_vm5, %v1850_v50 }
 0x10f   : > { %1666 = vmatmul.mubr.msk.f32.gmra.mxu1 %vm775_vm1, %v535_v34  ;;  %1668 = vmatmul.mubr.msk.f32.gmra.mxu0 %vm775_vm1, %v535_v34  ;;  %v766_v1 = vpop.f32.mrf.mxu1 }
 0x110   : > { %1143 = vmatprep.mubr.f32.mxu1 %v1849_v0  ;;  %1220 = vmatprep.mubr.f32.mxu0 %v1849_v0 }
 0x111   : > { %1683 = vmatprep.subr.msk.mxu1 %vm1056_vm6, %v1850_v50  ;;  %v770_v4 = vpop.f32.mrf.mxu1 }
 0x113   : > { %1677 = vmatmul.mubr.msk.f32.vlgmr.msra.gmra.mxu1 %vm284_vm0, %v1071_v51  ;;  %1681 = vmatmul.mubr.msk.f32.vlgmr.msra.gmra.mxu0 %vm284_vm0, %v1071_v51  ;;  %v772_v9 = vpop.f32.mrf.mxu1 }
 0x114   : > { %1149 = vmatprep.mubr.f32.mxu1 %v1849_v0  ;;  %1226 = vmatprep.mubr.f32.mxu0 %v1849_v0 }
 0x115   : > { %1684 = vmatpush1.msk.msra.mxu1 %vm1055_vm7, %v1850_v50 }
 0x117   : > { %1678 = vmatmul.mubr.msk.f32.gmra.mxu1 %vm284_vm0, %v1072_v52  ;;  %1682 = vmatmul.mubr.msk.f32.gmra.mxu0 %vm284_vm0, %v1072_v52 }
 0x118   : > { %1297 = vmatprep.mubr.f32.mxu1 %v1849_v0  ;;  %1380 = vmatprep.mubr.f32.mxu0 %v1849_v0 }
 0x11b   : > { %1685 = vmatmul.mubr.msk.f32.vlgmr.msra.gmra.mxu1 %vm284_vm0, %v1071_v51 }
 0x11c   : > { %1303 = vmatprep.mubr.f32.mxu1 %v1849_v0 }
 0x11f   : > { %1686 = vmatmul.mubr.msk.f32.gmra.mxu1 %vm284_vm0, %v1072_v52 }
 0x120   : > { %1457 = vmatprep.mubr.f32.mxu1 %v1849_v0 }
 0x1c2   : > { %v848_v2 = vpop.f32.mrf.mxu0 }
 0x1c3   : > { %v849_v11 = vadd.f32 %v848_v2, %v610_v55 }
 0x1c4   : > { %v850_v3 = vpop.f32.mrf.mxu0 }
 0x1c5   : > { %v851_v8 = vadd.f32 %v850_v3, %v612_v56  ;;  %v1013_v19 = vmax.f32 %v849_v11, 0.0 }
 0x1c6   : > { %v854_v5 = vpop.f32.mrf.mxu0 }
 0x1c7   : > { %v855_v6 = vadd.f32 %v854_v5, %v616_v58  ;;  %v1014_v16 = vmax.f32 %v851_v8, 0.0 }
 0x1c8   : > { %v856_v7 = vpop.f32.mrf.mxu0 }
 0x1c9   : > { %v857_v10 = vadd.f32 %v856_v7, %v618_v60  ;;  %v1019_v15 = vmax.f32 %v855_v6, 0.0 }
 0x1cb   : > { %v1020_v12 = vmax.f32 %v857_v10, 0.0  ;;  %v925_v13 = vpop.f32.mrf.mxu1  ;;  %v1002_v14 = vpop.f32.mrf.mxu0 }
 0x1cc   : > { %v926_v32 = vadd.f32 %v925_v13, %v687_v57  ;;  %v1003_v33 = vadd.f32 %v1002_v14, %v764_v62 }
 0x1cd   : > { %v927_v17 = vpop.f32.mrf.mxu1  ;;  %v1004_v18 = vpop.f32.mrf.mxu0  ;;  %1344 = vmatprep.subr.mxu0 %v1020_v12 }
 0x1ce   : > { %1345 = vmatpush1.msra.mxu0 %v1019_v15  ;;  %v928_v27 = vadd.f32 %v927_v17, %v689_v59  ;;  %v1005_v28 = vadd.f32 %v1004_v18, %v766_v1  ;;  %v1015_v40 = vmax.f32 %v926_v32, 0.0  ;;  %v1017_v41 = vmax.f32 %v1003_v33, 0.0 }
 0x1cf   : > { %v931_v21 = vpop.f32.mrf.mxu1  ;;  %v1008_v22 = vpop.f32.mrf.mxu0  ;;  %1346 = vmatprep.subr.mxu0 %v1014_v16 }
 0x1d0   : > { %1347 = vmatpush1.msra.mxu0 %v1013_v19  ;;  %v932_v23 = vadd.f32 %v931_v21, %v693_v61  ;;  %v1009_v24 = vadd.f32 %v1008_v22, %v770_v4  ;;  %v1016_v38 = vmax.f32 %v928_v27, 0.0  ;;  %v1018_v39 = vmax.f32 %v1005_v28, 0.0 }
 0x1d1   : > { %v933_v25 = vpop.f32.mrf.mxu1  ;;  %v1010_v26 = vpop.f32.mrf.mxu0  ;;  %1687 = vmatmul.mubr.msk.f32.vlgmr.msra.gmra.mxu0 %vm775_vm1, %v1069_v20 }
 0x1d2   : > { %v934_v29 = vadd.f32 %v933_v25, %v695_v63  ;;  %v1011_v30 = vadd.f32 %v1010_v26, %v772_v9  ;;  %1386 = vmatprep.mubr.f32.mxu0 %v1849_v0  ;;  %v1021_v36 = vmax.f32 %v932_v23, 0.0  ;;  %v1023_v37 = vmax.f32 %v1009_v24, 0.0 }
 0x1d3   : > { %v1145_v42 = vpop.f32.mrf.mxu1  ;;  %v1222_v44 = vpop.f32.mrf.mxu0 }
 0x1d4   : > { %v1022_v34 = vmax.f32 %v934_v29, 0.0  ;;  %v1024_v35 = vmax.f32 %v1011_v30, 0.0 }
 0x1d5   : > { %1688 = vmatmul.mubr.msk.f32.gmra.mxu0 %vm775_vm1, %v1070_v31  ;;  %v1147_v43 = vpop.f32.mrf.mxu1  ;;  %v1224_v46 = vpop.f32.mrf.mxu0 }
 0x1d6   : > { %1421 = vmatprep.subr.mxu1 %v1022_v34  ;;  %1498 = vmatprep.subr.mxu0 %v1024_v35 }
 0x1d7   : > { %1422 = vmatpush1.msra.mxu1 %v1021_v36  ;;  %1499 = vmatpush1.msra.mxu0 %v1023_v37  ;;  %v1151_v45 = vpop.f32.mrf.mxu1  ;;  %v1228_v48 = vpop.f32.mrf.mxu0 }
 0x1d8   : > { %1423 = vmatprep.subr.mxu1 %v1016_v38  ;;  %1500 = vmatprep.subr.mxu0 %v1018_v39 }
 0x1d9   : > { %1424 = vmatpush1.msra.mxu1 %v1015_v40  ;;  %1501 = vmatpush1.msra.mxu0 %v1017_v41  ;;  %v1153_v47 = vpop.f32.mrf.mxu1  ;;  %v1230_v50 = vpop.f32.mrf.mxu0 }
 0x1da   : > { %1534 = vmatprep.mubr.f32.mxu0 %v1849_v0  ;;  %1689 = vmatmul.mubr.msk.f32.vlgmr.msra.gmra.mxu1 %vm775_vm1, %v1069_v20 }
 0x1db   : > { %1691 = vmatmul.mubr.msk.f32.vlgmr.msra.gmra.mxu0 %vm775_vm1, %v1069_v20  ;;  %1463 = vmatprep.mubr.f32.mxu1 %v1849_v0  ;;  %v1299_v49 = vpop.f32.mrf.mxu1 }
 0x1dc   : > { %1540 = vmatprep.mubr.f32.mxu0 %v1849_v0 }
 0x1dd   : > { %v1301_v51 = vpop.f32.mrf.mxu1 }
 0x1de   : > { %1690 = vmatmul.mubr.msk.f32.gmra.mxu1 %vm775_vm1, %v1070_v31 }
 0x1df   : > { %1692 = vmatmul.mubr.msk.f32.gmra.mxu0 %vm775_vm1, %v1070_v31  ;;  %v1305_v55 = vpop.f32.mrf.mxu1 }
 0x1e1   : > { %v1307_v59 = vpop.f32.mrf.mxu1 }
 0x291   : > { %v1382_v52 = vpop.f32.mrf.mxu0 }
 0x292   : > { %v1383_v53 = vadd.f32 %v1382_v52, %v1145_v42 }
 0x293   : > { %v1384_v54 = vpop.f32.mrf.mxu0 }
 0x294   : > { %1547 = vst [vmem:[%s2099_s12] sm:$0xff] %v1383_v53  ;;  %v1385_v0 = vadd.f32 %v1384_v54, %v1147_v43 }
 0x295   : > { %v1388_v56 = vpop.f32.mrf.mxu0 }
 0x296   : > { %1548 = vst [vmem:[%s2099_s12 + $0x8] sm:$0xff] %v1385_v0  ;;  %v1389_v57 = vadd.f32 %v1388_v56, %v1151_v45 }
 0x297   : > { %v1390_v58 = vpop.f32.mrf.mxu0 }
 0x298   : > { %1553 = vst [vmem:[%s2099_s12 + $0x30] sm:$0xff] %v1389_v57  ;;  %v1391_v60 = vadd.f32 %v1390_v58, %v1153_v47 }
 0x29a   : > { %1554 = vst [vmem:[%s2099_s12 + $0x38] sm:$0xff] %v1391_v60  ;;  %v1459_v61 = vpop.f32.mrf.mxu1 }
 0x29b   : > { %v1460_v62 = vadd.f32 %v1459_v61, %v1222_v44  ;;  %v1536_v63 = vpop.f32.mrf.mxu0 }
 0x29c   : > { %v1537_v1 = vadd.f32 %v1536_v63, %v1299_v49  ;;  %v1461_v2 = vpop.f32.mrf.mxu1 }
 0x29d   : > { %1549 = vst [vmem:[%s2099_s12 + $0x10] sm:$0xff] %v1460_v62  ;;  %v1462_v3 = vadd.f32 %v1461_v2, %v1224_v46  ;;  %v1538_v4 = vpop.f32.mrf.mxu0 }
 0x29e   : > { %1551 = vst [vmem:[%s2099_s12 + $0x20] sm:$0xff] %v1537_v1  ;;  %v1539_v5 = vadd.f32 %v1538_v4, %v1301_v51  ;;  %v1465_v6 = vpop.f32.mrf.mxu1 }
 0x29f   : > { %1550 = vst [vmem:[%s2099_s12 + $0x18] sm:$0xff] %v1462_v3  ;;  %v1466_v7 = vadd.f32 %v1465_v6, %v1228_v48  ;;  %v1542_v8 = vpop.f32.mrf.mxu0 }
 0x2a0   : > { %1552 = vst [vmem:[%s2099_s12 + $0x28] sm:$0xff] %v1539_v5  ;;  %v1543_v9 = vadd.f32 %v1542_v8, %v1305_v55  ;;  %v1467_v10 = vpop.f32.mrf.mxu1 }
 0x2a1   : > { %1555 = vst [vmem:[%s2099_s12 + $0x40] sm:$0xff] %v1466_v7  ;;  %v1468_v11 = vadd.f32 %v1467_v10, %v1230_v50  ;;  %v1544_v12 = vpop.f32.mrf.mxu0 }
 0x2a2   : > { %1557 = vst [vmem:[%s2099_s12 + $0x50] sm:$0xff] %v1543_v9  ;;  %v1545_v13 = vadd.f32 %v1544_v12, %v1307_v59 }
 0x2a3   : > { %1556 = vst [vmem:[%s2099_s12 + $0x48] sm:$0xff] %v1468_v11 }
 0x2a4   : > { %1558 = vst [vmem:[%s2099_s12 + $0x58] sm:$0xff] %v1545_v13 }
 0x2a5   : > { %1795 = shalt.err (!%p1792_p10)
}
 0x2a6   : > { %s1796_s18 = scalar_lea.hbm %s2114_s26, 1536  ;;  %s1800_s13 = scalar_lea.hbm %s2169_s6, 3072 }
 0x2a7   : > { %p1797_p2 = scmp.ne.s32.totalorder %s2114_s26, %s1796_s18  ;;  %p1801_p7 = scmp.lt.s32.totalorder %s2114_s26, %s2169_s6 }
 0x2a8   : > { %p1802_p5 = scmp.lt.s32.totalorder %s1800_s13, %s1796_s18 }
 0x2a9   : > { %p1798_p4 = pnand %p1797_p2, %p2179_p12 }
 0x2aa   : > { %p1803_p6 = por %p1802_p5, %p1801_p7 }
 0x2ab   : > { %p1799_p9 = pneg %p1798_p4 }
 0x2ad   : > { %p1804_p11 = pnand %p1803_p6, %p1799_p9 }
 0x2af   : > { %1807 = shalt.err (!%p1804_p11)
}
 0x2b0   : > { %s1852_s17 = smov 768   ;;  %s1853_s25 = smov 1536  }
 0x2b1   : > { %s1854_s29 = smov 48  }
 0x2b2   : > { %1705 = dma.vmem_to_hbm [thread:$0]  (%p2179_p12), %s2117_s14, 1536, %s2114_s26, %s1560_s28, %s1852_s17, %s1853_s25, %s1854_s29  }
 0x2b3 PF: > { %s1588_s15 = sand.u32 1, %s1834_s21   ;;  %p2180_p13 = scmp.ne.s32.totalorder %s2174_s9, 0 }
 0x2b4   : > { %p2181_p0 = scmp.ge.s32.totalorder %s1846_s24, 2  ;;  %s1589_s16 = scalar_lea.sflag [#allocation4], %s1588_s15 }
 0x2b6   : > { %p1712_p1 = pnand %p2181_p0, %p2180_p13 }
 0x2b8   : > { %p1713_p3 = pneg %p1712_p1 }
 0x2ba   : > { %1829 = dma.done.wait (%p1713_p3), %s1589_s16, 1536  }
 0x2bb   : > { %1831 = vsyncadd (%p1713_p3), %s1589_s16, 4294965760  ;;  %p19_p8 = scmp.ge.s32.totalorder %s1915_s27, 4   ;;  %s2182_s21 = smov %s1838_s22 }
 0x2bc   : > { %s2183_s22 = smov %s1842_s23  ;;  %s2184_s23 = smov %s1927_s30 }
 0x2bd   : > { %s2185_s24 = smov %s1915_s27  ;;  %21 = sbr.rel (!%p19_p8) target bundleno = 5 (0x5), region = 89 }
 0x2c2   :  { %1594 = vsyncpa [#allocation3], 1 }
 0x2c3   :  { %1596 = vsyncpa [#allocation3 + $0x1], 1 }
 0x2c4   :  { %1597 = vsyncpa [#allocation4], 1 }
 0x2c5   :  { %1599 = vsyncpa [#allocation4 + $0x1], 1 }

</bundles_post_ra>
